<compile_context>
chip_gen: v5e
topology: v5e:2x2
jax: 0.10.0
libtpu: 0.0.40
codegen_flags: <defaults>
</compile_context>

<pallas_src>
import jax
import jax.numpy as jnp
from jax.experimental import pallas as pl
from jax.experimental.pallas import tpu as pltpu


def _round_up(n, m):
    return ((n + m - 1) // m) * m


def _round_down(n, m):
    return (n // m) * m


def _vmem_budget_bytes():
    # ~75% of physical VMEM; conservative fallback assumes v7x (64 MiB per TensorCore).
    try:
        cap = int(pltpu.get_tpu_info().vmem_capacity_bytes)
    except Exception:  # pragma: no cover - interpret mode / older jax
        cap = 64 << 20
    return (cap * 3) // 4


def _control_flow_kernel(x_ref, y_ref, w1_ref, w2_ref, b_ref, o_ref):
    # o = x @ W1^T + y @ (sign * W2^T) + (b1 + sign * b2), accumulated in f32.
    acc = jnp.dot(x_ref[...], w1_ref[...], preferred_element_type=jnp.float32)
    acc = acc + jnp.dot(y_ref[...], w2_ref[...], preferred_element_type=jnp.float32)
    o_ref[...] = (acc + b_ref[...]).astype(o_ref.dtype)


def control_flow_model(x, y, w1, b1, w2, b2, *, tile_b=8192):
    """Forward pass of ControlFlowModel.

    x, y : (..., 10) float32, same shape
    w1, w2: (10, 10) PyTorch convention (out_features, in_features)
    b1, b2: (10,)
    """
    assert x.shape == y.shape
    # Static control flow: rank is known at trace time, exactly like torch's .dim().
    sign = 1.0 if x.ndim == 2 else -1.0

    orig_shape = x.shape
    in_f = orig_shape[-1]
    out_f = w1.shape[0]

    # Flatten leading dims so the kernel always sees a 2-D (B, F) problem.
    x2 = x.reshape(-1, in_f)
    y2 = y.reshape(-1, in_f)
    B = x2.shape[0]

    if B == 0:  # empty batch: nothing to compute
        return jnp.zeros((*orig_shape[:-1], out_f), dtype=x.dtype)

    # Fold the static branch into the parameters (constant-folded under jit, tiny arrays).
    w1t = w1.T                       # (in, out)
    w2s = sign * w2.T                # (in, out), sign baked in
    b = (b1 + sign * b2).reshape(1, out_f)

    # ---- batch-tile selection -------------------------------------------------------
    tb = _round_up(min(int(tile_b), _round_up(B, 8)), 8)
    # Keep >= 2 grid steps when there is enough work so both v7x TensorCores are fed.
    if B > 4096 and tb >= B:
        tb = _round_up(-(-B // 2), 8)
    # VMEM budget: a (tb, F) f32 block is lane-padded F -> 128 (tb*512 B per buffer);
    # x, y, out are each double-buffered -> ~6 * tb * 512 B, weights/bias negligible.
    budget = _vmem_budget_bytes()
    per_row = 6 * 128 * 4
    max_tb = _round_down(max(budget - (8 << 20), 1 << 20) // per_row, 8)
    tb = max(8, min(tb, max_tb))

    grid_len = pl.cdiv(B, tb)
    vmem_need = per_row * tb + (1 << 20)
    vmem_limit = int(min(budget, max(32 << 20, vmem_need + (8 << 20))))

    cost = pl.CostEstimate(
        flops=4 * B * in_f * out_f,          # two (B,in)x(in,out) matmuls
        transcendentals=0,
        bytes_accessed=(2 * B * in_f + B * out_f) * x.dtype.itemsize,
    )

    out2 = pl.pallas_call(
        _control_flow_kernel,
        out_shape=jax.ShapeDtypeStruct((B, out_f), x.dtype),
        grid=(grid_len,),
        in_specs=[
            pl.BlockSpec((tb, in_f), lambda i: (i, 0)),     # x tile
            pl.BlockSpec((tb, in_f), lambda i: (i, 0)),     # y tile
            pl.BlockSpec((in_f, out_f), lambda i: (0, 0)),  # W1^T (resident)
            pl.BlockSpec((in_f, out_f), lambda i: (0, 0)),  # sign*W2^T (resident)
            pl.BlockSpec((1, out_f), lambda i: (0, 0)),     # combined bias
        ],
        out_specs=pl.BlockSpec((tb, out_f), lambda i: (i, 0)),
        compiler_params=pltpu.CompilerParams(
            dimension_semantics=("parallel",),
            vmem_limit_bytes=vmem_limit,
        ),
        cost_estimate=cost,
    )(x2, y2, w1t, w2s, b)

    return out2.reshape(*orig_shape[:-1], out_f)


# Parameter preprocessing (transpose / bias fold) is constant-folded & fused under jit.
control_flow_model_jit = jax.jit(control_flow_model, static_argnames=("tile_b",))


def _init_params(key, in_f=10, out_f=10):
    # Deterministic init mimicking nn.Linear's uniform(-1/sqrt(in), 1/sqrt(in)).
    k1, k2, k3, k4 = jax.random.split(key, 4)
    bound = 1.0 / jnp.sqrt(jnp.float32(in_f))
    w1 = jax.random.uniform(k1, (out_f, in_f), jnp.float32, -bound, bound)
    b1 = jax.random.uniform(k2, (out_f,), jnp.float32, -bound, bound)
    w2 = jax.random.uniform(k3, (out_f, in_f), jnp.float32, -bound, bound)
    b2 = jax.random.uniform(k4, (out_f,), jnp.float32, -bound, bound)
    return w1, b1, w2, b2


if __name__ == "__main__":
    key = jax.random.PRNGKey(0)
    kp, kx, ky, kx3, ky3, kxt, kyt = jax.random.split(key, 7)

    w1, b1, w2, b2 = _init_params(kp)
    F = 10

    # Case 1: 2-D inputs -> takes the "x1 + y1" branch (dim() == 2).
    x = jax.random.normal(kx, (8, F), jnp.float32)
    y = jax.random.normal(ky, (8, F), jnp.float32)
    out = jax.block_until_ready(control_flow_model_jit(x, y, w1, b1, w2, b2))
    ref = (x @ w1.T + b1) + (y @ w2.T + b2)
    assert out.shape == (8, F)
    assert jnp.allclose(out, ref, atol=1e-5), "mismatch vs reference (2-D branch)"

    # Case 2: 3-D inputs -> "x1 - y1" branch; B=6 exercises a ragged (clamped) tile.
    x3 = jax.random.normal(kx3, (2, 3, F), jnp.float32)
    y3 = jax.random.normal(ky3, (2, 3, F), jnp.float32)
    out3 = jax.block_until_ready(control_flow_model_jit(x3, y3, w1, b1, w2, b2))
    ref3 = (x3 @ w1.T + b1) - (y3 @ w2.T + b2)
    assert out3.shape == (2, 3, F)
    assert jnp.allclose(out3, ref3, atol=1e-5), "mismatch vs reference (non-2-D branch)"

    # Case 3: multi-tile grid with a partial final tile (B=20, tile_b=8 -> grid=3).
    xt = jax.random.normal(kxt, (20, F), jnp.float32)
    yt = jax.random.normal(kyt, (20, F), jnp.float32)
    outt = jax.block_until_ready(
        control_flow_model_jit(xt, yt, w1, b1, w2, b2, tile_b=8))
    reft = (xt @ w1.T + b1) + (yt @ w2.T + b2)
    assert outt.shape == (20, F)
    assert jnp.allclose(outt, reft, atol=1e-5), "mismatch vs reference (ragged grid)"

    print("KERNEL_OK")
</pallas_src>

<mosaic_0001>
module attributes {stable_mosaic.version = 11 : i64} {
  func.func @_control_flow_kernel(%arg0: i32, %arg1: memref<8x10xf32, #tpu.memory_space<vmem>>, %arg2: memref<8x10xf32, #tpu.memory_space<vmem>>, %arg3: memref<10x10xf32, #tpu.memory_space<vmem>>, %arg4: memref<10x10xf32, #tpu.memory_space<vmem>>, %arg5: memref<1x10xf32, #tpu.memory_space<vmem>>, %arg6: memref<8x10xf32, #tpu.memory_space<vmem>>) attributes {dimension_semantics = [#tpu.dimension_semantics<parallel>], iteration_bounds = array<i64: 1>, scalar_prefetch = 0 : i64, scratch_operands = 0 : i64, tpu.core_type = #tpu.core_type<tc>, window_params = [{transform_indices = @transform_0, window_bounds = array<i64: 8, 10>}, {transform_indices = @transform_1, window_bounds = array<i64: 8, 10>}, {pipeline_mode = #tpu.pipeline_mode<synchronous>, transform_indices = @transform_2, window_bounds = array<i64: 10, 10>}, {pipeline_mode = #tpu.pipeline_mode<synchronous>, transform_indices = @transform_3, window_bounds = array<i64: 10, 10>}, {pipeline_mode = #tpu.pipeline_mode<synchronous>, transform_indices = @transform_4, window_bounds = array<i64: 1, 10>}, {transform_indices = @transform_5, window_bounds = array<i64: 8, 10>}]} {
    %c0 = arith.constant 0 : index
    %c0_0 = arith.constant 0 : index
    %0 = vector.load %arg1[%c0, %c0_0] : memref<8x10xf32, #tpu.memory_space<vmem>>, vector<8x10xf32>
    %c0_1 = arith.constant 0 : index
    %c0_2 = arith.constant 0 : index
    %1 = vector.load %arg3[%c0_1, %c0_2] : memref<10x10xf32, #tpu.memory_space<vmem>>, vector<10x10xf32>
    %cst = arith.constant dense<0.000000e+00> : vector<8x10xf32>
    %2 = tpu.matmul %0, %1, %cst {dimension_numbers = #tpu.dot_dimension_numbers<[1], [0], [0], [1], [0, 0, 1, 1], [], []>} : vector<8x10xf32>, vector<10x10xf32>, vector<8x10xf32> -> vector<8x10xf32>
    %c0_3 = arith.constant 0 : index
    %c0_4 = arith.constant 0 : index
    %3 = vector.load %arg2[%c0_3, %c0_4] : memref<8x10xf32, #tpu.memory_space<vmem>>, vector<8x10xf32>
    %c0_5 = arith.constant 0 : index
    %c0_6 = arith.constant 0 : index
    %4 = vector.load %arg4[%c0_5, %c0_6] : memref<10x10xf32, #tpu.memory_space<vmem>>, vector<10x10xf32>
    %cst_7 = arith.constant dense<0.000000e+00> : vector<8x10xf32>
    %5 = tpu.matmul %3, %4, %cst_7 {dimension_numbers = #tpu.dot_dimension_numbers<[1], [0], [0], [1], [0, 0, 1, 1], [], []>} : vector<8x10xf32>, vector<10x10xf32>, vector<8x10xf32> -> vector<8x10xf32>
    %6 = arith.addf %2, %5 : vector<8x10xf32>
    %c0_8 = arith.constant 0 : index
    %c0_9 = arith.constant 0 : index
    %7 = vector.load %arg5[%c0_8, %c0_9] : memref<1x10xf32, #tpu.memory_space<vmem>>, vector<1x10xf32>
    %8 = vector.broadcast %7 : vector<1x10xf32> to vector<8x10xf32>
    %9 = arith.addf %6, %8 : vector<8x10xf32>
    %c0_10 = arith.constant 0 : index
    %c0_11 = arith.constant 0 : index
    %10 = vector.load %arg6[%c0_10, %c0_11] : memref<8x10xf32, #tpu.memory_space<vmem>>, vector<8x10xf32>
    tpu.vector_store %arg6[%c0_10, %c0_11], %9 {strides = array<i32>} : memref<8x10xf32, #tpu.memory_space<vmem>>, vector<8x10xf32>,
    return
  }
  func.func @transform_0(%arg0: i32) -> (i32, i32) {
    %c0_i32 = arith.constant 0 : i32
    %c0_i32_0 = arith.constant 0 : i32
    return %arg0, %c0_i32 : i32, i32
  }
  func.func @transform_1(%arg0: i32) -> (i32, i32) {
    %c0_i32 = arith.constant 0 : i32
    %c0_i32_0 = arith.constant 0 : i32
    return %arg0, %c0_i32 : i32, i32
  }
  func.func @transform_2(%arg0: i32) -> (i32, i32) {
    %c0_i32 = arith.constant 0 : i32
    %c0_i32_0 = arith.constant 0 : i32
    %c0_i32_1 = arith.constant 0 : i32
    return %c0_i32, %c0_i32_0 : i32, i32
  }
  func.func @transform_3(%arg0: i32) -> (i32, i32) {
    %c0_i32 = arith.constant 0 : i32
    %c0_i32_0 = arith.constant 0 : i32
    %c0_i32_1 = arith.constant 0 : i32
    return %c0_i32, %c0_i32_0 : i32, i32
  }
  func.func @transform_4(%arg0: i32) -> (i32, i32) {
    %c0_i32 = arith.constant 0 : i32
    %c0_i32_0 = arith.constant 0 : i32
    %c0_i32_1 = arith.constant 0 : i32
    return %c0_i32, %c0_i32_0 : i32, i32
  }
  func.func @transform_5(%arg0: i32) -> (i32, i32) {
    %c0_i32 = arith.constant 0 : i32
    %c0_i32_0 = arith.constant 0 : i32
    return %arg0, %c0_i32 : i32, i32
  }
}

</mosaic_0001>

<bundles_post_ra>
// kernel: control_flow_model.1
= control target key start
LH: loop header
LB: loop body
LE: loop exit
PB: predicated region body
PF: predicated region fallthrough
CT: control target
= control target key end

     0   :  { %vm31_vm0 = vcmask 1041408   ;;  %vm27_vm1 = vcmask 80896   ;;  %s193_s0 = inlined_call_operand.vmem [shape: f32[8,10], index: 0, kind: input, shape index: {}]   ;;  %s194_s1 = inlined_call_operand.vmem [shape: f32[8,10], index: 1, kind: input, shape index: {}]   ;;  %s195_s2 = inlined_call_operand.vmem [shape: f32[10,10], index: 2, kind: input, shape index: {}]   ;;  %s196_s3 = inlined_call_operand.vmem [shape: f32[10,10], index: 3, kind: input, shape index: {}]   ;;  %s197_s4 = inlined_call_operand.vmem [shape: f32[1,10], index: 4, kind: input, shape index: {}]   ;;  %s198_s5 = inlined_call_operand.hbm [shape: f32[8,10], index: 5, kind: output, shape index: {}]  }
   0x1   :  { %v26_v0 = vld [vmem:[%s196_s3 + $0x8] sm:$0x3]  ;;  %v25_v2 = vld [vmem:[%s196_s3] sm:$0xff] }
   0x2   :  { %v23_v1 = vld [vmem:[%s195_s2 + $0x8] sm:$0x3]  ;;  %103 = vmatpush.msk.msra.mxu0 %vm31_vm0, %v26_v0  ;;  %v22_v3 = vld [vmem:[%s195_s2] sm:$0xff] }
   0x3   :  { %105 = vmatpush.msk.msra.mxu1 %vm31_vm0, %v23_v1  ;;  %v24_v4 = vld [vmem:[%s194_s1] sm:$0xff] }
   0x4   :  { %v21_v5 = vld [vmem:[%s193_s0] sm:$0xff] }
   0x5   :  { %10 = vsyncpa [#allocation3], 0  ;;  %50 = vmatpush.msra.mxu0 %v25_v2  ;;  %76 = vmatpush.msra.mxu1 %v22_v3  ;;  %v108_v6 = vld [vmem:[%s197_s4] ss:$0 sm:$0xff]  ;;  %s135_s2 = smov [#allocation2]   ;;  %s94_s8 = sshll.u32 %s198_s5, 4  ;;  %s95_s8 = int_to_ptr.hbm [resolvable:$true] %s94_s8 }
   0x6   :  { %104 = vmatmul.msk.f32.vlgmr.msra.gmra.mxu0 %vm27_vm1, %v24_v4  ;;  %106 = vmatmul.msk.f32.vlgmr.msra.gmra.mxu1 %vm27_vm1, %v21_v5  ;;  %s92_s1 = sshll.u32 %s135_s2, 4  ;;  %s93_s1 = int_to_ptr.vmem [resolvable:$true] %s92_s1 }
  0x83   :  { %v52_v7 = vpop.f32.mrf.mxu0  ;;  %v78_v8 = vpop.f32.mrf.mxu1 }
  0x84   :  { %v79_v9 = vadd.f32 %v78_v8, %v52_v7 }
  0x86   :  { %v85_v10 = vadd.f32 %v108_v6, %v79_v9 }
  0x88   :  { %86 = vst.msk [vmem:[#allocation2] sm:$0xff] %vm27_vm1, %v85_v10 }
  0x89   :  { %97 = dma.vmem_to_hbm [thread:$0]  %s93_s1, 128, %s95_s8, [#allocation3]  }
  0x8a   :  { %133 = dma.done.wait [#allocation3], 128  }
  0x8b   :  { %134 = vsyncadd [#allocation3], 4294967168 }
  0x8c   :  { %102 = vsyncpa [#allocation3], 1 }

</bundles_post_ra>
